<compile_context>
chip_gen: v7x
topology: tpu7x:2x2x1
jax: 0.10.0
libtpu: 0.0.40
codegen_flags: <defaults>
</compile_context>

<pallas_src>
import functools

import jax
import jax.numpy as jnp
from jax import lax
from jax.experimental import pallas as pl
from jax.experimental.pallas import tpu as pltpu


# ------------------------------ fused kernel --------------------------------
# Inputs:
#   xw_ref   : (T*Bp, 4H) f32   precomputed x @ W_ih + (b_ih+b_hh), time-major,
#                               batch padded to Bp (multiple of 8)
#   whh_ref  : (H, 4H)   bf16   lstm1 recurrent weights (pre-transposed)
#   whd_ref  : (H, 8H)   bf16   [lstm_activity | lstm_time] input weights
#   bhd_ref  : (1, 8H)   f32    stacked head biases (b_ih+b_hh each)
#   wfc_ref  : (2H, 128) bf16   block-diagonal [fc_activity ; fc_time]
#   bfc_ref  : (1, 128)  f32    packed FC biases
# Output:
#   out_ref  : (Bp, 128) f32    lanes [0:C] = act_out, lane [C] = time_out

def fused_kernel(xw_ref, whh_ref, whd_ref, bhd_ref, wfc_ref, bfc_ref, out_ref):
    Bp = out_ref.shape[0]
    T = xw_ref.shape[0] // Bp
    H = whh_ref.shape[0]
    whh = whh_ref[...]                      # loop-invariant: load once (bf16)

    # ---- lstm1 recurrence (h, c carried in registers) ----
    def step(t, carry):
        h, c = carry                                          # (Bp, H) f32
        start = pl.multiple_of(t * Bp, 8)                     # aligned sublane
        xw_t = xw_ref[pl.ds(start, Bp), :]                    # (Bp, 4H) f32
        gates = xw_t + jnp.dot(h.astype(jnp.bfloat16), whh,
                               preferred_element_type=jnp.float32)
        # Two full-vreg EUP passes, then static lane slices (PyTorch i,f,g,o).
        sg = jax.nn.sigmoid(gates)
        tg = jnp.tanh(gates)
        c = sg[:, 1 * H:2 * H] * c + sg[:, 0 * H:1 * H] * tg[:, 2 * H:3 * H]
        h = sg[:, 3 * H:4 * H] * jnp.tanh(c)
        return h, c

    h0 = jnp.zeros((Bp, H), jnp.float32)
    h, _ = lax.fori_loop(0, T, step, (h0, h0), unroll=True)

    # ---- both single-step head LSTMs in one matmul ----
    # h0 = c0 = 0  =>  c1 = i*g, h1 = o*tanh(c1); forget gate is dead.
    gh = jnp.dot(h.astype(jnp.bfloat16), whd_ref[...],
                 preferred_element_type=jnp.float32) + bhd_ref[...]   # (Bp,8H)
    sg = jax.nn.sigmoid(gh)
    tg = jnp.tanh(gh)
    ha = sg[:, 3 * H:4 * H] * jnp.tanh(sg[:, 0 * H:1 * H] * tg[:, 2 * H:3 * H])
    ht = sg[:, 7 * H:8 * H] * jnp.tanh(sg[:, 4 * H:5 * H] * tg[:, 6 * H:7 * H])

    # ---- both FC layers in one block-diagonal matmul, lane-dense store ----
    hcat = jnp.concatenate([ha, ht], axis=1).astype(jnp.bfloat16)     # (Bp,2H)
    out_ref[...] = (jnp.dot(hcat, wfc_ref[...],
                            preferred_element_type=jnp.float32)
                    + bfc_ref[...])


def fused_forward(xw_flat, whh, w_heads, b_heads, w_fc, b_fc, *, b_pad):
    out_w = w_fc.shape[1]
    vmem = pl.BlockSpec(memory_space=pltpu.MemorySpace.VMEM)
    return pl.pallas_call(
        fused_kernel,
        out_shape=jax.ShapeDtypeStruct((b_pad, out_w), jnp.float32),
        in_specs=[vmem] * 6,
        out_specs=vmem,
    )(xw_flat, whh, w_heads, b_heads, w_fc, b_fc)


# ----------------------- one-time parameter preparation ----------------------

def prepare_params(params, num_classes):
    """Parameter-only packing, done ONCE (outside the per-call jit path)."""
    F = params["emb"].shape[1]
    H = params["l1_whh"].shape[0]
    C = num_classes
    w_ih = params["l1_wih"]                                   # (F+1, 4H)

    # Embedding lookup + input projection + bias, folded per class:
    #   xw[b,t] = emb_proj_b[activities[b,t]] + times[b,t] * w_time
    emb_proj_b = jnp.dot(params["emb"], w_ih[:F]) + params["l1_b"]   # (C, 4H)
    w_time = w_ih[F]                                                 # (4H,)

    # Stacked head-LSTM input weights: one (B,H)@(H,8H) matmul in-kernel.
    w_heads = jnp.concatenate([params["la_wih"], params["lt_wih"]], axis=1)
    b_heads = jnp.concatenate([params["la_b"], params["lt_b"]], axis=1)

    # Block-diagonal FC weights packed into one lane-dense output slab.
    out_w = max(128, ((C + 1 + 127) // 128) * 128)
    w_fc = jnp.zeros((2 * H, out_w), jnp.float32)
    w_fc = w_fc.at[:H, :C].set(params["fca_w"])
    w_fc = w_fc.at[H:, C:C + 1].set(params["fct_w"])
    b_fc = jnp.zeros((1, out_w), jnp.float32)
    b_fc = b_fc.at[:, :C].set(params["fca_b"])
    b_fc = b_fc.at[:, C:C + 1].set(params["fct_b"])

    return {
        "emb_proj_b": emb_proj_b.astype(jnp.float32),
        "w_time":     w_time.astype(jnp.float32),
        # MXU operands pre-cast to bf16 (accumulation stays f32 in-kernel).
        "whh":        params["l1_whh"].astype(jnp.bfloat16),
        "w_heads":    w_heads.astype(jnp.bfloat16),
        "b_heads":    b_heads.astype(jnp.float32),
        "w_fc":       w_fc.astype(jnp.bfloat16),
        "b_fc":       b_fc.astype(jnp.float32),
    }


# ------------------------------ full forward ---------------------------------

@functools.partial(jax.jit, static_argnames=("num_classes",))
def lstm_model_forward(prepped, activities, times, *, num_classes):
    B, T = activities.shape
    Bp = ((B + 7) // 8) * 8          # pad batch to a full sublane multiple

    act_p = jnp.zeros((Bp, T), activities.dtype).at[:B].set(activities)
    tim_p = jnp.zeros((Bp, T), jnp.float32).at[:B].set(times)

    # Dense, time-major gate-input slab (T*Bp, 4H): hoists the whole input
    # projection out of the serial recurrence; rows for padded batch entries
    # are harmless and discarded at the end.
    xw = (jnp.take(prepped["emb_proj_b"], act_p.T, axis=0)     # (T, Bp, 4H)
          + tim_p.T[..., None] * prepped["w_time"])
    xw_flat = xw.reshape(T * Bp, -1).astype(jnp.float32)

    # TODO(synk): nn.Dropout(0.2) on h_last — identity in eval/inference mode.

    out = fused_forward(xw_flat, prepped["whh"], prepped["w_heads"],
                        prepped["b_heads"], prepped["w_fc"], prepped["b_fc"],
                        b_pad=Bp)
    act_out = out[:B, :num_classes]
    time_out = out[:B, num_classes:num_classes + 1]
    return act_out, time_out


# ------------------------- pure-JAX reference (check) ------------------------

def _lstm_gates(gates, H):
    # PyTorch gate order: input, forget, cell(g), output
    i = jax.nn.sigmoid(gates[:, 0 * H:1 * H])
    f = jax.nn.sigmoid(gates[:, 1 * H:2 * H])
    g = jnp.tanh(gates[:, 2 * H:3 * H])
    o = jax.nn.sigmoid(gates[:, 3 * H:4 * H])
    return i, f, g, o


def reference_forward(params, activities, times, num_classes):
    act_emb = jnp.take(params["emb"], activities, axis=0)
    x = jnp.concatenate([act_emb, times[..., None]], axis=-1)
    B, T, D = x.shape
    H = params["l1_whh"].shape[0]

    def lstm_step(carry, x_t):
        h, c = carry
        gates = x_t @ params["l1_wih"] + h @ params["l1_whh"] + params["l1_b"]
        i, f, g, o = _lstm_gates(gates, H)
        c = f * c + i * g
        h = o * jnp.tanh(c)
        return (h, c), None

    h0 = jnp.zeros((B, H), jnp.float32)
    (h, _), _ = lax.scan(lstm_step, (h0, h0), jnp.transpose(x, (1, 0, 2)))

    ga = h @ params["la_wih"] + params["la_b"]
    i, f, g, o = _lstm_gates(ga, H)
    ha = o * jnp.tanh(i * g)
    act_out = ha @ params["fca_w"] + params["fca_b"]

    gt = h @ params["lt_wih"] + params["lt_b"]
    i, f, g, o = _lstm_gates(gt, H)
    ht = o * jnp.tanh(i * g)
    time_out = ht @ params["fct_w"] + params["fct_b"]
    return act_out, time_out


# ---------------------------------- params -----------------------------------

def init_params(key, num_features, num_classes, hidden):
    D = num_features + 1
    H = hidden
    k = 1.0 / jnp.sqrt(H)
    ks = jax.random.split(key, 16)

    def u(k_, shape):
        return jax.random.uniform(k_, shape, jnp.float32, -k, k)

    # stored pre-transposed: (in, out); LSTM biases folded (b_ih + b_hh)
    return {
        "emb":    jax.random.normal(ks[0], (num_classes, num_features),
                                    jnp.float32),
        "l1_wih": u(ks[1], (D, 4 * H)),
        "l1_whh": u(ks[2], (H, 4 * H)),
        "l1_b":   (u(ks[3], (1, 4 * H)) + u(ks[4], (1, 4 * H))),
        "la_wih": u(ks[5], (H, 4 * H)),
        "la_b":   (u(ks[6], (1, 4 * H)) + u(ks[7], (1, 4 * H))),
        "lt_wih": u(ks[8], (H, 4 * H)),
        "lt_b":   (u(ks[9], (1, 4 * H)) + u(ks[10], (1, 4 * H))),
        "fca_w":  u(ks[11], (H, num_classes)),
        "fca_b":  u(ks[12], (1, num_classes)),
        "fct_w":  u(ks[13], (H, 1)),
        "fct_b":  u(ks[14], (1, 1)),
    }


# ----------------------------------- main -------------------------------------

if __name__ == "__main__":
    num_classes = 8
    num_features = 10
    hidden = 32
    B, T = 2, 8

    key = jax.random.PRNGKey(0)
    kp, ka, kt = jax.random.split(key, 3)

    params = init_params(kp, num_features, num_classes, hidden)
    activities = jax.random.randint(ka, (B, T), 0, num_classes, jnp.int32)
    times = jax.random.uniform(kt, (B, T), jnp.float32)

    # One-time parameter packing (hoisted out of the per-call path).
    prepped = jax.tree_util.tree_map(jax.block_until_ready,
                                     prepare_params(params, num_classes))

    act_out, time_out = lstm_model_forward(prepped, activities, times,
                                           num_classes=num_classes)
    jax.block_until_ready((act_out, time_out))

    ref_act, ref_time = reference_forward(params, activities, times,
                                          num_classes)
    assert act_out.shape == (B, num_classes) and time_out.shape == (B, 1)
    # bf16 MXU operands (f32 accumulation / elementwise): 1e-2 tolerance.
    assert jnp.allclose(act_out, ref_act, rtol=1e-2, atol=1e-2)
    assert jnp.allclose(time_out, ref_time, rtol=1e-2, atol=1e-2)

    print("KERNEL_OK")
</pallas_src>

<mosaic_0001>
module attributes {stable_mosaic.version = 11 : i64} {
  func.func @fused_kernel(%arg0: memref<64x128xf32, #tpu.memory_space<vmem>>, %arg1: memref<32x128xbf16, #tpu.memory_space<vmem>>, %arg2: memref<32x256xbf16, #tpu.memory_space<vmem>>, %arg3: memref<1x256xf32, #tpu.memory_space<vmem>>, %arg4: memref<64x128xbf16, #tpu.memory_space<vmem>>, %arg5: memref<1x128xf32, #tpu.memory_space<vmem>>, %arg6: memref<8x128xf32, #tpu.memory_space<vmem>>) attributes {dimension_semantics = [], scalar_prefetch = 0 : i64, scratch_operands = 0 : i64, tpu.core_type = #tpu.core_type<tc>} {
    %c0 = arith.constant 0 : index
    %c0_0 = arith.constant 0 : index
    %0 = vector.load %arg1[%c0, %c0_0] : memref<32x128xbf16, #tpu.memory_space<vmem>>, vector<32x128xbf16>
    %cst = arith.constant 0.000000e+00 : f32
    %1 = vector.broadcast %cst : f32 to vector<8x32xf32>
    %c0_i32 = arith.constant 0 : i32
    %c8_i32 = arith.constant 8 : i32
    %2 = arith.muli %c0_i32, %c8_i32 : i32
    %3 = tpu.assume_multiple %2, 8 : i32
    %4 = arith.index_cast %3 : i32 to index
    %c0_1 = arith.constant 0 : index
    %5 = vector.load %arg0[%4, %c0_1] : memref<64x128xf32, #tpu.memory_space<vmem>>, vector<8x128xf32>
    %6 = arith.truncf %1 : vector<8x32xf32> to vector<8x32xbf16>
    %cst_2 = arith.constant dense<0.000000e+00> : vector<8x128xf32>
    %7 = tpu.matmul %6, %0, %cst_2 {dimension_numbers = #tpu.dot_dimension_numbers<[1], [0], [0], [1], [0, 0, 1, 1], [], []>} : vector<8x32xbf16>, vector<32x128xbf16>, vector<8x128xf32> -> vector<8x128xf32>
    %8 = arith.addf %5, %7 : vector<8x128xf32>
    %9 = arith.negf %8 : vector<8x128xf32>
    %10 = math.exp %9 : vector<8x128xf32>
    %cst_3 = arith.constant 1.000000e+00 : f32
    %11 = vector.broadcast %cst_3 : f32 to vector<8x128xf32>
    %12 = arith.addf %11, %10 : vector<8x128xf32>
    %13 = arith.divf %11, %12 : vector<8x128xf32>
    %14 = math.tanh %8 : vector<8x128xf32>
    %15 = vector.extract_strided_slice %13 {offsets = [0, 32], sizes = [8, 32], strides = [1, 1]} : vector<8x128xf32> to vector<8x32xf32>
    %16 = arith.mulf %15, %1 : vector<8x32xf32>
    %17 = vector.extract_strided_slice %13 {offsets = [0, 0], sizes = [8, 32], strides = [1, 1]} : vector<8x128xf32> to vector<8x32xf32>
    %18 = vector.extract_strided_slice %14 {offsets = [0, 64], sizes = [8, 32], strides = [1, 1]} : vector<8x128xf32> to vector<8x32xf32>
    %19 = arith.mulf %17, %18 : vector<8x32xf32>
    %20 = arith.addf %16, %19 : vector<8x32xf32>
    %21 = vector.extract_strided_slice %13 {offsets = [0, 96], sizes = [8, 32], strides = [1, 1]} : vector<8x128xf32> to vector<8x32xf32>
    %22 = math.tanh %20 : vector<8x32xf32>
    %23 = arith.mulf %21, %22 : vector<8x32xf32>
    %c1_i32 = arith.constant 1 : i32
    %c8_i32_4 = arith.constant 8 : i32
    %24 = arith.muli %c1_i32, %c8_i32_4 : i32
    %25 = tpu.assume_multiple %24, 8 : i32
    %26 = arith.index_cast %25 : i32 to index
    %c0_5 = arith.constant 0 : index
    %27 = vector.load %arg0[%26, %c0_5] : memref<64x128xf32, #tpu.memory_space<vmem>>, vector<8x128xf32>
    %28 = arith.truncf %23 : vector<8x32xf32> to vector<8x32xbf16>
    %cst_6 = arith.constant dense<0.000000e+00> : vector<8x128xf32>
    %29 = tpu.matmul %28, %0, %cst_6 {dimension_numbers = #tpu.dot_dimension_numbers<[1], [0], [0], [1], [0, 0, 1, 1], [], []>} : vector<8x32xbf16>, vector<32x128xbf16>, vector<8x128xf32> -> vector<8x128xf32>
    %30 = arith.addf %27, %29 : vector<8x128xf32>
    %31 = arith.negf %30 : vector<8x128xf32>
    %32 = math.exp %31 : vector<8x128xf32>
    %cst_7 = arith.constant 1.000000e+00 : f32
    %33 = vector.broadcast %cst_7 : f32 to vector<8x128xf32>
    %34 = arith.addf %33, %32 : vector<8x128xf32>
    %35 = arith.divf %33, %34 : vector<8x128xf32>
    %36 = math.tanh %30 : vector<8x128xf32>
    %37 = vector.extract_strided_slice %35 {offsets = [0, 32], sizes = [8, 32], strides = [1, 1]} : vector<8x128xf32> to vector<8x32xf32>
    %38 = arith.mulf %37, %20 : vector<8x32xf32>
    %39 = vector.extract_strided_slice %35 {offsets = [0, 0], sizes = [8, 32], strides = [1, 1]} : vector<8x128xf32> to vector<8x32xf32>
    %40 = vector.extract_strided_slice %36 {offsets = [0, 64], sizes = [8, 32], strides = [1, 1]} : vector<8x128xf32> to vector<8x32xf32>
    %41 = arith.mulf %39, %40 : vector<8x32xf32>
    %42 = arith.addf %38, %41 : vector<8x32xf32>
    %43 = vector.extract_strided_slice %35 {offsets = [0, 96], sizes = [8, 32], strides = [1, 1]} : vector<8x128xf32> to vector<8x32xf32>
    %44 = math.tanh %42 : vector<8x32xf32>
    %45 = arith.mulf %43, %44 : vector<8x32xf32>
    %c2_i32 = arith.constant 2 : i32
    %c8_i32_8 = arith.constant 8 : i32
    %46 = arith.muli %c2_i32, %c8_i32_8 : i32
    %47 = tpu.assume_multiple %46, 8 : i32
    %48 = arith.index_cast %47 : i32 to index
    %c0_9 = arith.constant 0 : index
    %49 = vector.load %arg0[%48, %c0_9] : memref<64x128xf32, #tpu.memory_space<vmem>>, vector<8x128xf32>
    %50 = arith.truncf %45 : vector<8x32xf32> to vector<8x32xbf16>
    %cst_10 = arith.constant dense<0.000000e+00> : vector<8x128xf32>
    %51 = tpu.matmul %50, %0, %cst_10 {dimension_numbers = #tpu.dot_dimension_numbers<[1], [0], [0], [1], [0, 0, 1, 1], [], []>} : vector<8x32xbf16>, vector<32x128xbf16>, vector<8x128xf32> -> vector<8x128xf32>
    %52 = arith.addf %49, %51 : vector<8x128xf32>
    %53 = arith.negf %52 : vector<8x128xf32>
    %54 = math.exp %53 : vector<8x128xf32>
    %cst_11 = arith.constant 1.000000e+00 : f32
    %55 = vector.broadcast %cst_11 : f32 to vector<8x128xf32>
    %56 = arith.addf %55, %54 : vector<8x128xf32>
    %57 = arith.divf %55, %56 : vector<8x128xf32>
    %58 = math.tanh %52 : vector<8x128xf32>
    %59 = vector.extract_strided_slice %57 {offsets = [0, 32], sizes = [8, 32], strides = [1, 1]} : vector<8x128xf32> to vector<8x32xf32>
    %60 = arith.mulf %59, %42 : vector<8x32xf32>
    %61 = vector.extract_strided_slice %57 {offsets = [0, 0], sizes = [8, 32], strides = [1, 1]} : vector<8x128xf32> to vector<8x32xf32>
    %62 = vector.extract_strided_slice %58 {offsets = [0, 64], sizes = [8, 32], strides = [1, 1]} : vector<8x128xf32> to vector<8x32xf32>
    %63 = arith.mulf %61, %62 : vector<8x32xf32>
    %64 = arith.addf %60, %63 : vector<8x32xf32>
    %65 = vector.extract_strided_slice %57 {offsets = [0, 96], sizes = [8, 32], strides = [1, 1]} : vector<8x128xf32> to vector<8x32xf32>
    %66 = math.tanh %64 : vector<8x32xf32>
    %67 = arith.mulf %65, %66 : vector<8x32xf32>
    %c3_i32 = arith.constant 3 : i32
    %c8_i32_12 = arith.constant 8 : i32
    %68 = arith.muli %c3_i32, %c8_i32_12 : i32
    %69 = tpu.assume_multiple %68, 8 : i32
    %70 = arith.index_cast %69 : i32 to index
    %c0_13 = arith.constant 0 : index
    %71 = vector.load %arg0[%70, %c0_13] : memref<64x128xf32, #tpu.memory_space<vmem>>, vector<8x128xf32>
    %72 = arith.truncf %67 : vector<8x32xf32> to vector<8x32xbf16>
    %cst_14 = arith.constant dense<0.000000e+00> : vector<8x128xf32>
    %73 = tpu.matmul %72, %0, %cst_14 {dimension_numbers = #tpu.dot_dimension_numbers<[1], [0], [0], [1], [0, 0, 1, 1], [], []>} : vector<8x32xbf16>, vector<32x128xbf16>, vector<8x128xf32> -> vector<8x128xf32>
    %74 = arith.addf %71, %73 : vector<8x128xf32>
    %75 = arith.negf %74 : vector<8x128xf32>
    %76 = math.exp %75 : vector<8x128xf32>
    %cst_15 = arith.constant 1.000000e+00 : f32
    %77 = vector.broadcast %cst_15 : f32 to vector<8x128xf32>
    %78 = arith.addf %77, %76 : vector<8x128xf32>
    %79 = arith.divf %77, %78 : vector<8x128xf32>
    %80 = math.tanh %74 : vector<8x128xf32>
    %81 = vector.extract_strided_slice %79 {offsets = [0, 32], sizes = [8, 32], strides = [1, 1]} : vector<8x128xf32> to vector<8x32xf32>
    %82 = arith.mulf %81, %64 : vector<8x32xf32>
    %83 = vector.extract_strided_slice %79 {offsets = [0, 0], sizes = [8, 32], strides = [1, 1]} : vector<8x128xf32> to vector<8x32xf32>
    %84 = vector.extract_strided_slice %80 {offsets = [0, 64], sizes = [8, 32], strides = [1, 1]} : vector<8x128xf32> to vector<8x32xf32>
    %85 = arith.mulf %83, %84 : vector<8x32xf32>
    %86 = arith.addf %82, %85 : vector<8x32xf32>
    %87 = vector.extract_strided_slice %79 {offsets = [0, 96], sizes = [8, 32], strides = [1, 1]} : vector<8x128xf32> to vector<8x32xf32>
    %88 = math.tanh %86 : vector<8x32xf32>
    %89 = arith.mulf %87, %88 : vector<8x32xf32>
    %c4_i32 = arith.constant 4 : i32
    %c8_i32_16 = arith.constant 8 : i32
    %90 = arith.muli %c4_i32, %c8_i32_16 : i32
    %91 = tpu.assume_multiple %90, 8 : i32
    %92 = arith.index_cast %91 : i32 to index
    %c0_17 = arith.constant 0 : index
    %93 = vector.load %arg0[%92, %c0_17] : memref<64x128xf32, #tpu.memory_space<vmem>>, vector<8x128xf32>
    %94 = arith.truncf %89 : vector<8x32xf32> to vector<8x32xbf16>
    %cst_18 = arith.constant dense<0.000000e+00> : vector<8x128xf32>
    %95 = tpu.matmul %94, %0, %cst_18 {dimension_numbers = #tpu.dot_dimension_numbers<[1], [0], [0], [1], [0, 0, 1, 1], [], []>} : vector<8x32xbf16>, vector<32x128xbf16>, vector<8x128xf32> -> vector<8x128xf32>
    %96 = arith.addf %93, %95 : vector<8x128xf32>
    %97 = arith.negf %96 : vector<8x128xf32>
    %98 = math.exp %97 : vector<8x128xf32>
    %cst_19 = arith.constant 1.000000e+00 : f32
    %99 = vector.broadcast %cst_19 : f32 to vector<8x128xf32>
    %100 = arith.addf %99, %98 : vector<8x128xf32>
    %101 = arith.divf %99, %100 : vector<8x128xf32>
    %102 = math.tanh %96 : vector<8x128xf32>
    %103 = vector.extract_strided_slice %101 {offsets = [0, 32], sizes = [8, 32], strides = [1, 1]} : vector<8x128xf32> to vector<8x32xf32>
    %104 = arith.mulf %103, %86 : vector<8x32xf32>
    %105 = vector.extract_strided_slice %101 {offsets = [0, 0], sizes = [8, 32], strides = [1, 1]} : vector<8x128xf32> to vector<8x32xf32>
    %106 = vector.extract_strided_slice %102 {offsets = [0, 64], sizes = [8, 32], strides = [1, 1]} : vector<8x128xf32> to vector<8x32xf32>
    %107 = arith.mulf %105, %106 : vector<8x32xf32>
    %108 = arith.addf %104, %107 : vector<8x32xf32>
    %109 = vector.extract_strided_slice %101 {offsets = [0, 96], sizes = [8, 32], strides = [1, 1]} : vector<8x128xf32> to vector<8x32xf32>
    %110 = math.tanh %108 : vector<8x32xf32>
    %111 = arith.mulf %109, %110 : vector<8x32xf32>
    %c5_i32 = arith.constant 5 : i32
    %c8_i32_20 = arith.constant 8 : i32
    %112 = arith.muli %c5_i32, %c8_i32_20 : i32
    %113 = tpu.assume_multiple %112, 8 : i32
    %114 = arith.index_cast %113 : i32 to index
    %c0_21 = arith.constant 0 : index
    %115 = vector.load %arg0[%114, %c0_21] : memref<64x128xf32, #tpu.memory_space<vmem>>, vector<8x128xf32>
    %116 = arith.truncf %111 : vector<8x32xf32> to vector<8x32xbf16>
    %cst_22 = arith.constant dense<0.000000e+00> : vector<8x128xf32>
    %117 = tpu.matmul %116, %0, %cst_22 {dimension_numbers = #tpu.dot_dimension_numbers<[1], [0], [0], [1], [0, 0, 1, 1], [], []>} : vector<8x32xbf16>, vector<32x128xbf16>, vector<8x128xf32> -> vector<8x128xf32>
    %118 = arith.addf %115, %117 : vector<8x128xf32>
    %119 = arith.negf %118 : vector<8x128xf32>
    %120 = math.exp %119 : vector<8x128xf32>
    %cst_23 = arith.constant 1.000000e+00 : f32
    %121 = vector.broadcast %cst_23 : f32 to vector<8x128xf32>
    %122 = arith.addf %121, %120 : vector<8x128xf32>
    %123 = arith.divf %121, %122 : vector<8x128xf32>
    %124 = math.tanh %118 : vector<8x128xf32>
    %125 = vector.extract_strided_slice %123 {offsets = [0, 32], sizes = [8, 32], strides = [1, 1]} : vector<8x128xf32> to vector<8x32xf32>
    %126 = arith.mulf %125, %108 : vector<8x32xf32>
    %127 = vector.extract_strided_slice %123 {offsets = [0, 0], sizes = [8, 32], strides = [1, 1]} : vector<8x128xf32> to vector<8x32xf32>
    %128 = vector.extract_strided_slice %124 {offsets = [0, 64], sizes = [8, 32], strides = [1, 1]} : vector<8x128xf32> to vector<8x32xf32>
    %129 = arith.mulf %127, %128 : vector<8x32xf32>
    %130 = arith.addf %126, %129 : vector<8x32xf32>
    %131 = vector.extract_strided_slice %123 {offsets = [0, 96], sizes = [8, 32], strides = [1, 1]} : vector<8x128xf32> to vector<8x32xf32>
    %132 = math.tanh %130 : vector<8x32xf32>
    %133 = arith.mulf %131, %132 : vector<8x32xf32>
    %c6_i32 = arith.constant 6 : i32
    %c8_i32_24 = arith.constant 8 : i32
    %134 = arith.muli %c6_i32, %c8_i32_24 : i32
    %135 = tpu.assume_multiple %134, 8 : i32
    %136 = arith.index_cast %135 : i32 to index
    %c0_25 = arith.constant 0 : index
    %137 = vector.load %arg0[%136, %c0_25] : memref<64x128xf32, #tpu.memory_space<vmem>>, vector<8x128xf32>
    %138 = arith.truncf %133 : vector<8x32xf32> to vector<8x32xbf16>
    %cst_26 = arith.constant dense<0.000000e+00> : vector<8x128xf32>
    %139 = tpu.matmul %138, %0, %cst_26 {dimension_numbers = #tpu.dot_dimension_numbers<[1], [0], [0], [1], [0, 0, 1, 1], [], []>} : vector<8x32xbf16>, vector<32x128xbf16>, vector<8x128xf32> -> vector<8x128xf32>
    %140 = arith.addf %137, %139 : vector<8x128xf32>
    %141 = arith.negf %140 : vector<8x128xf32>
    %142 = math.exp %141 : vector<8x128xf32>
    %cst_27 = arith.constant 1.000000e+00 : f32
    %143 = vector.broadcast %cst_27 : f32 to vector<8x128xf32>
    %144 = arith.addf %143, %142 : vector<8x128xf32>
    %145 = arith.divf %143, %144 : vector<8x128xf32>
    %146 = math.tanh %140 : vector<8x128xf32>
    %147 = vector.extract_strided_slice %145 {offsets = [0, 32], sizes = [8, 32], strides = [1, 1]} : vector<8x128xf32> to vector<8x32xf32>
    %148 = arith.mulf %147, %130 : vector<8x32xf32>
    %149 = vector.extract_strided_slice %145 {offsets = [0, 0], sizes = [8, 32], strides = [1, 1]} : vector<8x128xf32> to vector<8x32xf32>
    %150 = vector.extract_strided_slice %146 {offsets = [0, 64], sizes = [8, 32], strides = [1, 1]} : vector<8x128xf32> to vector<8x32xf32>
    %151 = arith.mulf %149, %150 : vector<8x32xf32>
    %152 = arith.addf %148, %151 : vector<8x32xf32>
    %153 = vector.extract_strided_slice %145 {offsets = [0, 96], sizes = [8, 32], strides = [1, 1]} : vector<8x128xf32> to vector<8x32xf32>
    %154 = math.tanh %152 : vector<8x32xf32>
    %155 = arith.mulf %153, %154 : vector<8x32xf32>
    %c7_i32 = arith.constant 7 : i32
    %c8_i32_28 = arith.constant 8 : i32
    %156 = arith.muli %c7_i32, %c8_i32_28 : i32
    %157 = tpu.assume_multiple %156, 8 : i32
    %158 = arith.index_cast %157 : i32 to index
    %c0_29 = arith.constant 0 : index
    %159 = vector.load %arg0[%158, %c0_29] : memref<64x128xf32, #tpu.memory_space<vmem>>, vector<8x128xf32>
    %160 = arith.truncf %155 : vector<8x32xf32> to vector<8x32xbf16>
    %cst_30 = arith.constant dense<0.000000e+00> : vector<8x128xf32>
    %161 = tpu.matmul %160, %0, %cst_30 {dimension_numbers = #tpu.dot_dimension_numbers<[1], [0], [0], [1], [0, 0, 1, 1], [], []>} : vector<8x32xbf16>, vector<32x128xbf16>, vector<8x128xf32> -> vector<8x128xf32>
    %162 = arith.addf %159, %161 : vector<8x128xf32>
    %163 = arith.negf %162 : vector<8x128xf32>
    %164 = math.exp %163 : vector<8x128xf32>
    %cst_31 = arith.constant 1.000000e+00 : f32
    %165 = vector.broadcast %cst_31 : f32 to vector<8x128xf32>
    %166 = arith.addf %165, %164 : vector<8x128xf32>
    %167 = arith.divf %165, %166 : vector<8x128xf32>
    %168 = math.tanh %162 : vector<8x128xf32>
    %169 = vector.extract_strided_slice %167 {offsets = [0, 32], sizes = [8, 32], strides = [1, 1]} : vector<8x128xf32> to vector<8x32xf32>
    %170 = arith.mulf %169, %152 : vector<8x32xf32>
    %171 = vector.extract_strided_slice %167 {offsets = [0, 0], sizes = [8, 32], strides = [1, 1]} : vector<8x128xf32> to vector<8x32xf32>
    %172 = vector.extract_strided_slice %168 {offsets = [0, 64], sizes = [8, 32], strides = [1, 1]} : vector<8x128xf32> to vector<8x32xf32>
    %173 = arith.mulf %171, %172 : vector<8x32xf32>
    %174 = arith.addf %170, %173 : vector<8x32xf32>
    %175 = vector.extract_strided_slice %167 {offsets = [0, 96], sizes = [8, 32], strides = [1, 1]} : vector<8x128xf32> to vector<8x32xf32>
    %176 = math.tanh %174 : vector<8x32xf32>
    %177 = arith.mulf %175, %176 : vector<8x32xf32>
    %c8_i32_32 = arith.constant 8 : i32
    %178 = arith.truncf %177 : vector<8x32xf32> to vector<8x32xbf16>
    %c0_33 = arith.constant 0 : index
    %c0_34 = arith.constant 0 : index
    %179 = vector.load %arg2[%c0_33, %c0_34] : memref<32x256xbf16, #tpu.memory_space<vmem>>, vector<32x256xbf16>
    %cst_35 = arith.constant dense<0.000000e+00> : vector<8x256xf32>
    %180 = tpu.matmul %178, %179, %cst_35 {dimension_numbers = #tpu.dot_dimension_numbers<[1], [0], [0], [1], [0, 0, 1, 1], [], []>} : vector<8x32xbf16>, vector<32x256xbf16>, vector<8x256xf32> -> vector<8x256xf32>
    %c0_36 = arith.constant 0 : index
    %c0_37 = arith.constant 0 : index
    %181 = vector.load %arg3[%c0_36, %c0_37] : memref<1x256xf32, #tpu.memory_space<vmem>>, vector<1x256xf32>
    %182 = vector.broadcast %181 : vector<1x256xf32> to vector<8x256xf32>
    %183 = arith.addf %180, %182 : vector<8x256xf32>
    %184 = arith.negf %183 : vector<8x256xf32>
    %185 = math.exp %184 : vector<8x256xf32>
    %cst_38 = arith.constant 1.000000e+00 : f32
    %186 = vector.broadcast %cst_38 : f32 to vector<8x256xf32>
    %187 = arith.addf %186, %185 : vector<8x256xf32>
    %188 = arith.divf %186, %187 : vector<8x256xf32>
    %189 = math.tanh %183 : vector<8x256xf32>
    %190 = vector.extract_strided_slice %188 {offsets = [0, 96], sizes = [8, 32], strides = [1, 1]} : vector<8x256xf32> to vector<8x32xf32>
    %191 = vector.extract_strided_slice %188 {offsets = [0, 0], sizes = [8, 32], strides = [1, 1]} : vector<8x256xf32> to vector<8x32xf32>
    %192 = vector.extract_strided_slice %189 {offsets = [0, 64], sizes = [8, 32], strides = [1, 1]} : vector<8x256xf32> to vector<8x32xf32>
    %193 = arith.mulf %191, %192 : vector<8x32xf32>
    %194 = math.tanh %193 : vector<8x32xf32>
    %195 = arith.mulf %190, %194 : vector<8x32xf32>
    %196 = vector.extract_strided_slice %188 {offsets = [0, 224], sizes = [8, 32], strides = [1, 1]} : vector<8x256xf32> to vector<8x32xf32>
    %197 = vector.extract_strided_slice %188 {offsets = [0, 128], sizes = [8, 32], strides = [1, 1]} : vector<8x256xf32> to vector<8x32xf32>
    %198 = vector.extract_strided_slice %189 {offsets = [0, 192], sizes = [8, 32], strides = [1, 1]} : vector<8x256xf32> to vector<8x32xf32>
    %199 = arith.mulf %197, %198 : vector<8x32xf32>
    %200 = math.tanh %199 : vector<8x32xf32>
    %201 = arith.mulf %196, %200 : vector<8x32xf32>
    %202 = tpu.concatenate %195, %201 in 1 : vector<8x32xf32>, vector<8x32xf32> -> vector<8x64xf32>
    %203 = arith.truncf %202 : vector<8x64xf32> to vector<8x64xbf16>
    %c0_39 = arith.constant 0 : index
    %c0_40 = arith.constant 0 : index
    %204 = vector.load %arg4[%c0_39, %c0_40] : memref<64x128xbf16, #tpu.memory_space<vmem>>, vector<64x128xbf16>
    %cst_41 = arith.constant dense<0.000000e+00> : vector<8x128xf32>
    %205 = tpu.matmul %203, %204, %cst_41 {dimension_numbers = #tpu.dot_dimension_numbers<[1], [0], [0], [1], [0, 0, 1, 1], [], []>} : vector<8x64xbf16>, vector<64x128xbf16>, vector<8x128xf32> -> vector<8x128xf32>
    %c0_42 = arith.constant 0 : index
    %c0_43 = arith.constant 0 : index
    %206 = vector.load %arg5[%c0_42, %c0_43] : memref<1x128xf32, #tpu.memory_space<vmem>>, vector<1x128xf32>
    %207 = vector.broadcast %206 : vector<1x128xf32> to vector<8x128xf32>
    %208 = arith.addf %205, %207 : vector<8x128xf32>
    %c0_44 = arith.constant 0 : index
    %c0_45 = arith.constant 0 : index
    %209 = vector.load %arg6[%c0_44, %c0_45] : memref<8x128xf32, #tpu.memory_space<vmem>>, vector<8x128xf32>
    tpu.vector_store %arg6[%c0_44, %c0_45], %208 {strides = array<i32>} : memref<8x128xf32, #tpu.memory_space<vmem>>, vector<8x128xf32>,
    return
  }
}

</mosaic_0001>

<bundles_post_ra>
// kernel: lstm_model_forward.1
= control target key start
LH: loop header
LB: loop body
LE: loop exit
PB: predicated region body
PF: predicated region fallthrough
CT: control target
= control target key end

     0   :  { %v1086_v0 = vmov 0.0   ;;  %vm1087_vm0 = vmmov 0   ;;  %v1088_v3 = vmov 0   ;;  %s1089_s26 = smov 64   ;;  %s1090_s27 = smov 32   ;;  %vm41_vm1 = vcmask 261120   ;;  %s1295_s1 = inlined_call_operand.vmem [shape: bf16[32,128], index: 1, kind: input, shape index: {}]   ;;  %s1296_s0 = inlined_call_operand.vmem [shape: f32[64,128], index: 0, kind: input, shape index: {}]   ;;  %s1297_s2 = inlined_call_operand.vmem [shape: bf16[32,256], index: 2, kind: input, shape index: {}]   ;;  %s1298_s3 = inlined_call_operand.vmem [shape: f32[1,256], index: 3, kind: input, shape index: {}]   ;;  %s1299_s4 = inlined_call_operand.vmem [shape: bf16[64,128], index: 4, kind: input, shape index: {}]   ;;  %s1300_s5 = inlined_call_operand.vmem [shape: f32[1,128], index: 5, kind: input, shape index: {}]   ;;  %s1301_s6 = inlined_call_operand.vmem [shape: f32[8,128], index: 6, kind: output, shape index: {}]  }
   0x1   :  { %912 = vmatprep.subr.bf16.mxu0 %v1086_v0  ;;  %v1131_v1 = vld [vmem:[%s1295_s1] sm:$0xff]   ;;  %916 = vmatprep.mubr.msk.bf16.mxu0 %vm1087_vm0, %v1086_v0  ;;  %v1142_v2 = vld [vmem:[%s1295_s1 + $0x8] sm:$0xff]   ;;  %v852_v46 = vld [vmem:[%s1296_s0 + $0x10] sm:$0xff]  ;;  %s1091_s8 = smov 96   ;;  %vm797_vm2 = vcmask 523264  }
   0x2   :  { %920 = vmatprep.subr.bf16.mxu1 %v1086_v0  ;;  %924 = vmatprep.mubr.msk.bf16.mxu1 %vm1087_vm0, %v1086_v0  ;;  %v28_v4 = vld [vmem:[%s1296_s0] sm:$0xff]  ;;  %v849_v25 = vld [vmem:[%s1296_s0 + $0x8] sm:$0xff] }
   0x3   :  { %913 = vmatpush3.bf16.msra.mxu0 %v1131_v1  ;;  %921 = vmatpush3.bf16.msra.mxu1 %v1131_v1 }
   0x4   :  { %914 = vmatprep.subr.bf16.mxu0 %v1086_v0  ;;  %922 = vmatprep.subr.bf16.mxu1 %v1086_v0 }
   0x7   :  { %915 = vmatpush3.bf16.msra.mxu0 %v1142_v2  ;;  %923 = vmatpush3.bf16.msra.mxu1 %v1142_v2 }
   0x8   :  { %928 = vmatprep.subr.bf16.mxu0 %v1086_v0  ;;  %936 = vmatprep.subr.bf16.mxu1 %v1086_v0 }
   0xa   :  { %917 = vmatmul.mubr.bf16.vlgmr.msra.gmra.mrb[0].mxu0 %v1088_v3 }
   0xb   :  { %929 = vmatpush3.bf16.msra.mxu0 %v1131_v1  ;;  %932 = vmatprep.mubr.msk.bf16.mxu0 %vm1087_vm0, %v1086_v0 }
   0xc   :  { %930 = vmatprep.subr.bf16.mxu0 %v1086_v0 }
   0xf   :  { %931 = vmatpush3.bf16.msra.mxu0 %v1142_v2 }
  0x10   :  { %944 = vmatprep.subr.bf16.mxu0 %v1086_v0 }
  0xdd   :  { %v79_v5 = vpop.f32.mrb[0].mxu0 }
  0xde   :  { %v85_v6 = vadd.f32 %v79_v5, %v28_v4  ;;  %v918_v7 = vpop.f32.mrb[1].mxu0 }
  0xdf   :  { %v82_v8 = vpop.f32.mrb[2].mxu0  ;;  %v855_v7 = vld [vmem:[%s1296_s0 + $0x18] sm:$0xff] }
  0xe0   :  { %1006 = vtanh.f32 %v85_v6  ;;  %v919_v9 = vpop.f32.mrb[3].mxu0  ;;  %v848_v11 = vmul.f32 -1.442695, %v85_v6 }
  0xe2   :  { %1008 = vpow2.f32 %v848_v11 }
  0xea   :  { %v1007_v10 = vpop.eup %1006 }
  0xeb   :  { %95 = vrot.lane.b32.xlu0 %v1007_v10, %s1089_s26 }
  0xec   :  { %v1009_v12 = vpop.eup %1008 }
  0xed   :  { %v89_v13 = vadd.f32 1.0, %v1009_v12 }
  0xef   :  { %1010 = vrcp.f32 %v89_v13 }
  0xf9   :  { %v1011_v14 = vpop.eup %1010 }
  0xfa   :  { %v93_v17 = vmul.f32 0.0, %v1011_v14 }
 0x15d   :  { %v96_v15 = vpop.permute.xlu0 %95 }
 0x15e   :  { %v98_v16 = vmul.f32 %v1011_v14, %v96_v15 }
 0x160   :  { %100 = vrot.lane.b32.xlu0 %v98_v16, %s1090_s27 }
 0x1d2   :  { %v101_v18 = vpop.permute.xlu0 %100 }
 0x1d3   :  { %v103_v19 = vadd.f32 %v101_v18, %v93_v17 }
 0x1d5   :  { %1012 = vtanh.f32 %v103_v19 }
 0x1df   :  { %v1013_v20 = vpop.eup %1012 }
 0x1e0   :  { %106 = vrot.lane.b32.xlu1 %v1013_v20, %s1089_s26 }
 0x252   :  { %v107_v21 = vpop.permute.xlu1 %106 }
 0x253   :  { %v109_v22 = vmul.f32 %v1011_v14, %v107_v21 }
 0x255   :  { %v112_v23 = vpack.c.bf16 %v109_v22, %v109_v22 }
 0x257   :  { %114 = vrot.lane.b32.xlu1 %v112_v23, %s1090_s27 }
 0x2c9   :  { %v115_v24 = vpop.permute.xlu1 %114 }
 0x2ca   :  { %925 = vmatmul.mubr.msk.bf16.vlgmr.msra.gmra.mrb[0].mxu1 %vm41_vm1, %v115_v24 }
 0x2cb   :  { %937 = vmatpush3.bf16.msra.mxu1 %v1131_v1  ;;  %940 = vmatprep.mubr.msk.bf16.mxu1 %vm1087_vm0, %v1086_v0 }
 0x2cc   :  { %938 = vmatprep.subr.bf16.mxu1 %v1086_v0 }
 0x2cf   :  { %939 = vmatpush3.bf16.msra.mxu1 %v1142_v2 }
 0x2d0   :  { %952 = vmatprep.subr.bf16.mxu1 %v1086_v0 }
 0x39d   :  { %v153_v26 = vpop.f32.mrb[0].mxu1 }
 0x39e   :  { %v159_v27 = vadd.f32 %v849_v25, %v153_v26  ;;  %v926_v28 = vpop.f32.mrb[1].mxu1 }
 0x39f   :  { %v156_v29 = vpop.f32.mrb[2].mxu1  ;;  %v858_v28 = vld [vmem:[%s1296_s0 + $0x20] sm:$0xff] }
 0x3a0   :  { %1014 = vtanh.f32 %v159_v27  ;;  %v927_v30 = vpop.f32.mrb[3].mxu1  ;;  %v851_v32 = vmul.f32 -1.442695, %v159_v27 }
 0x3a2   :  { %1016 = vpow2.f32 %v851_v32 }
 0x3aa   :  { %v1015_v31 = vpop.eup %1014 }
 0x3ab   :  { %169 = vrot.lane.b32.xlu0 %v1015_v31, %s1089_s26 }
 0x3ac   :  { %v1017_v33 = vpop.eup %1016 }
 0x3ad   :  { %v163_v34 = vadd.f32 1.0, %v1017_v33 }
 0x3af   :  { %1018 = vrcp.f32 %v163_v34 }
 0x3b9   :  { %v1019_v35 = vpop.eup %1018 }
 0x3ba   :  { %v167_v38 = vmul.f32 %v1019_v35, %v103_v19 }
 0x41d   :  { %v170_v36 = vpop.permute.xlu0 %169 }
 0x41e   :  { %v172_v37 = vmul.f32 %v1019_v35, %v170_v36 }
 0x420   :  { %174 = vrot.lane.b32.xlu1 %v172_v37, %s1090_s27 }
 0x492   :  { %v175_v39 = vpop.permute.xlu1 %174 }
 0x493   :  { %v177_v40 = vadd.f32 %v175_v39, %v167_v38 }
 0x495   :  { %1020 = vtanh.f32 %v177_v40 }
 0x49f   :  { %v1021_v41 = vpop.eup %1020 }
 0x4a0   :  { %180 = vrot.lane.b32.xlu0 %v1021_v41, %s1089_s26 }
 0x512   :  { %v181_v42 = vpop.permute.xlu0 %180 }
 0x513   :  { %v183_v43 = vmul.f32 %v1019_v35, %v181_v42 }
 0x515   :  { %v186_v44 = vpack.c.bf16 %v183_v43, %v183_v43 }
 0x517   :  { %188 = vrot.lane.b32.xlu1 %v186_v44, %s1090_s27 }
 0x589   :  { %v189_v45 = vpop.permute.xlu1 %188 }
 0x58a   :  { %933 = vmatmul.mubr.msk.bf16.vlgmr.msra.gmra.mrb[4].mxu0 %vm41_vm1, %v189_v45 }
 0x58b   :  { %945 = vmatpush3.bf16.msra.mxu0 %v1131_v1  ;;  %948 = vmatprep.mubr.msk.bf16.mxu0 %vm1087_vm0, %v1086_v0 }
 0x58c   :  { %946 = vmatprep.subr.bf16.mxu0 %v1086_v0 }
 0x58f   :  { %947 = vmatpush3.bf16.msra.mxu0 %v1142_v2 }
 0x590   :  { %960 = vmatprep.subr.bf16.mxu0 %v1086_v0 }
 0x65d   :  { %v227_v47 = vpop.f32.mrb[4].mxu0 }
 0x65e   :  { %v233_v48 = vadd.f32 %v852_v46, %v227_v47  ;;  %v934_v49 = vpop.f32.mrb[5].mxu0 }
 0x65f   :  { %v230_v50 = vpop.f32.mrb[6].mxu0  ;;  %v861_v49 = vld [vmem:[%s1296_s0 + $0x28] sm:$0xff] }
 0x660   :  { %1022 = vtanh.f32 %v233_v48  ;;  %v935_v51 = vpop.f32.mrb[7].mxu0  ;;  %v854_v53 = vmul.f32 -1.442695, %v233_v48 }
 0x662   :  { %1024 = vpow2.f32 %v854_v53 }
 0x66a   :  { %v1023_v52 = vpop.eup %1022 }
 0x66b   :  { %243 = vrot.lane.b32.xlu0 %v1023_v52, %s1089_s26 }
 0x66c   :  { %v1025_v54 = vpop.eup %1024 }
 0x66d   :  { %v237_v55 = vadd.f32 1.0, %v1025_v54 }
 0x66f   :  { %1026 = vrcp.f32 %v237_v55 }
 0x679   :  { %v1027_v56 = vpop.eup %1026 }
 0x67a   :  { %v241_v59 = vmul.f32 %v1027_v56, %v177_v40 }
 0x6dd   :  { %v244_v57 = vpop.permute.xlu0 %243 }
 0x6de   :  { %v246_v58 = vmul.f32 %v1027_v56, %v244_v57 }
 0x6e0   :  { %248 = vrot.lane.b32.xlu1 %v246_v58, %s1090_s27 }
 0x752   :  { %v249_v60 = vpop.permute.xlu1 %248 }
 0x753   :  { %v251_v61 = vadd.f32 %v249_v60, %v241_v59 }
 0x755   :  { %1028 = vtanh.f32 %v251_v61 }
 0x75f   :  { %v1029_v62 = vpop.eup %1028 }
 0x760   :  { %254 = vrot.lane.b32.xlu0 %v1029_v62, %s1089_s26 }
 0x7d2   :  { %v255_v63 = vpop.permute.xlu0 %254 }
 0x7d3   :  { %v257_v4 = vmul.f32 %v1027_v56, %v255_v63 }
 0x7d5   :  { %v260_v5 = vpack.c.bf16 %v257_v4, %v257_v4 }
 0x7d7   :  { %262 = vrot.lane.b32.xlu1 %v260_v5, %s1090_s27 }
 0x849   :  { %v263_v6 = vpop.permute.xlu1 %262 }
 0x84a   :  { %941 = vmatmul.mubr.msk.bf16.vlgmr.msra.gmra.mrb[4].mxu1 %vm41_vm1, %v263_v6 }
 0x84b   :  { %953 = vmatpush3.bf16.msra.mxu1 %v1131_v1  ;;  %956 = vmatprep.mubr.msk.bf16.mxu1 %vm1087_vm0, %v1086_v0 }
 0x84c   :  { %954 = vmatprep.subr.bf16.mxu1 %v1086_v0 }
 0x84f   :  { %955 = vmatpush3.bf16.msra.mxu1 %v1142_v2 }
 0x850   :  { %968 = vmatprep.subr.bf16.mxu1 %v1086_v0 }
 0x91d   :  { %v301_v8 = vpop.f32.mrb[4].mxu1 }
 0x91e   :  { %v307_v9 = vadd.f32 %v855_v7, %v301_v8  ;;  %v942_v10 = vpop.f32.mrb[5].mxu1  ;;  %v864_v8 = vld [vmem:[%s1296_s0 + $0x30] sm:$0xff] }
 0x91f   :  { %v304_v11 = vpop.f32.mrb[6].mxu1 }
 0x920   :  { %1030 = vtanh.f32 %v307_v9  ;;  %v943_v12 = vpop.f32.mrb[7].mxu1  ;;  %v857_v14 = vmul.f32 -1.442695, %v307_v9 }
 0x922   :  { %1032 = vpow2.f32 %v857_v14 }
 0x92a   :  { %v1031_v13 = vpop.eup %1030 }
 0x92b   :  { %317 = vrot.lane.b32.xlu0 %v1031_v13, %s1089_s26 }
 0x92c   :  { %v1033_v15 = vpop.eup %1032 }
 0x92d   :  { %v311_v16 = vadd.f32 1.0, %v1033_v15 }
 0x92f   :  { %1034 = vrcp.f32 %v311_v16 }
 0x939   :  { %v1035_v17 = vpop.eup %1034 }
 0x93a   :  { %v315_v20 = vmul.f32 %v1035_v17, %v251_v61 }
 0x99d   :  { %v318_v18 = vpop.permute.xlu0 %317 }
 0x99e   :  { %v320_v19 = vmul.f32 %v1035_v17, %v318_v18 }
 0x9a0   :  { %322 = vrot.lane.b32.xlu1 %v320_v19, %s1090_s27 }
 0xa12   :  { %v323_v21 = vpop.permute.xlu1 %322 }
 0xa13   :  { %v325_v22 = vadd.f32 %v323_v21, %v315_v20 }
 0xa15   :  { %1036 = vtanh.f32 %v325_v22 }
 0xa1f   :  { %v1037_v23 = vpop.eup %1036 }
 0xa20   :  { %328 = vrot.lane.b32.xlu0 %v1037_v23, %s1089_s26 }
 0xa92   :  { %v329_v24 = vpop.permute.xlu0 %328 }
 0xa93   :  { %v331_v25 = vmul.f32 %v1035_v17, %v329_v24 }
 0xa95   :  { %v334_v26 = vpack.c.bf16 %v331_v25, %v331_v25 }
 0xa97   :  { %336 = vrot.lane.b32.xlu1 %v334_v26, %s1090_s27 }
 0xb09   :  { %v337_v27 = vpop.permute.xlu1 %336 }
 0xb0a   :  { %949 = vmatmul.mubr.msk.bf16.vlgmr.msra.gmra.mrb[8].mxu0 %vm41_vm1, %v337_v27 }
 0xb0b   :  { %961 = vmatpush3.bf16.msra.mxu0 %v1131_v1  ;;  %964 = vmatprep.mubr.msk.bf16.mxu0 %vm1087_vm0, %v1086_v0 }
 0xb0c   :  { %962 = vmatprep.subr.bf16.mxu0 %v1086_v0 }
 0xb0f   :  { %963 = vmatpush3.bf16.msra.mxu0 %v1142_v2 }
 0xbdd   :  { %v375_v29 = vpop.f32.mrb[8].mxu0 }
 0xbde   :  { %v381_v30 = vadd.f32 %v858_v28, %v375_v29  ;;  %v950_v31 = vpop.f32.mrb[9].mxu0  ;;  %v867_v28 = vld [vmem:[%s1296_s0 + $0x38] sm:$0xff] }
 0xbdf   :  { %v378_v32 = vpop.f32.mrb[10].mxu0 }
 0xbe0   :  { %1038 = vtanh.f32 %v381_v30  ;;  %v951_v33 = vpop.f32.mrb[11].mxu0  ;;  %v860_v35 = vmul.f32 -1.442695, %v381_v30 }
 0xbe2   :  { %1040 = vpow2.f32 %v860_v35 }
 0xbea   :  { %v1039_v34 = vpop.eup %1038 }
 0xbeb   :  { %391 = vrot.lane.b32.xlu0 %v1039_v34, %s1089_s26 }
 0xbec   :  { %v1041_v36 = vpop.eup %1040 }
 0xbed   :  { %v385_v37 = vadd.f32 1.0, %v1041_v36 }
 0xbef   :  { %1042 = vrcp.f32 %v385_v37 }
 0xbf9   :  { %v1043_v38 = vpop.eup %1042 }
 0xbfa   :  { %v389_v41 = vmul.f32 %v1043_v38, %v325_v22 }
 0xc5d   :  { %v392_v39 = vpop.permute.xlu0 %391 }
 0xc5e   :  { %v394_v40 = vmul.f32 %v1043_v38, %v392_v39 }
 0xc60   :  { %396 = vrot.lane.b32.xlu1 %v394_v40, %s1090_s27 }
 0xcd2   :  { %v397_v42 = vpop.permute.xlu1 %396 }
 0xcd3   :  { %v399_v43 = vadd.f32 %v397_v42, %v389_v41 }
 0xcd5   :  { %1044 = vtanh.f32 %v399_v43 }
 0xcdf   :  { %v1045_v44 = vpop.eup %1044 }
 0xce0   :  { %402 = vrot.lane.b32.xlu0 %v1045_v44, %s1089_s26  ;;  %v996_v44 = vld [vmem:[%s1297_s2] ss:$8 sps:$4 sm:$0xff]  }
 0xd52   :  { %v403_v45 = vpop.permute.xlu0 %402 }
 0xd53   :  { %v405_v46 = vmul.f32 %v1043_v38, %v403_v45  ;;  %v998_v45 = vld [vmem:[%s1297_s2 + $0x4] ss:$8 sps:$4 sm:$0xff]  }
 0xd54   :  { %671 = vmatprep.subr.bf16.mxu0 %v998_v45 }
 0xd55   :  { %v408_v47 = vpack.c.bf16 %v405_v46, %v405_v46  ;;  %v1001_v46 = vld [vmem:[%s1297_s2 + $0x14] ss:$8 sps:$4 sm:$0xff]  }
 0xd57   :  { %410 = vrot.lane.b32.xlu1 %v408_v47, %s1090_s27  ;;  %v999_v47 = vld [vmem:[%s1297_s2 + $0x10] ss:$8 sps:$4 sm:$0xff]  }
 0xdc9   :  { %v411_v48 = vpop.permute.xlu1 %410 }
 0xdca   :  { %957 = vmatmul.mubr.msk.bf16.vlgmr.msra.gmra.mrb[8].mxu1 %vm41_vm1, %v411_v48 }
 0xdcb   :  { %969 = vmatpush3.bf16.msra.mxu1 %v1131_v1  ;;  %972 = vmatprep.mubr.msk.bf16.mxu1 %vm1087_vm0, %v1086_v0 }
 0xdcc   :  { %970 = vmatprep.subr.bf16.mxu1 %v1086_v0 }
 0xdcf   :  { %971 = vmatpush3.bf16.msra.mxu1 %v1142_v2 }
 0xdd0   :  { %976 = vmatprep.subr.bf16.mxu1 %v1086_v0 }
 0xe9d   :  { %v449_v50 = vpop.f32.mrb[8].mxu1 }
 0xe9e   :  { %v455_v51 = vadd.f32 %v861_v49, %v449_v50  ;;  %v958_v52 = vpop.f32.mrb[9].mxu1 }
 0xe9f   :  { %v452_v53 = vpop.f32.mrb[10].mxu1 }
 0xea0   :  { %1046 = vtanh.f32 %v455_v51  ;;  %v959_v54 = vpop.f32.mrb[11].mxu1  ;;  %v863_v55 = vmul.f32 -1.442695, %v455_v51  ;;  %v635_v53 = vlaneseq }
 0xea2   :  { %1048 = vpow2.f32 %v863_v55  ;;  %v636_v54 = vshrl.u32 %v635_v53, 7  ;;  %v633_v55 = vld [vmem:[%s1298_s3] sm:$0x3] }
 0xeaa   :  { %v1047_v1 = vpop.eup %1046 }
 0xeab   :  { %465 = vrot.lane.b32.xlu0 %v1047_v1, %s1089_s26  ;;  %v637_v1 = vsub.s32 0, %v636_v54 }
 0xeac   :  { %v1049_v56 = vpop.eup %1048 }
 0xead   :  { %v459_v57 = vadd.f32 1.0, %v1049_v56  ;;  %v641_v56 = vsub.s32 1, %v636_v54 }
 0xeaf   :  { %1050 = vrcp.f32 %v459_v57  ;;  %v638_v57 = vrot.slane %v633_v55, %v637_v1 }
 0xeb9   :  { %v1051_v2 = vpop.eup %1050 }
 0xeba   :  { %v463_v60 = vmul.f32 %v1051_v2, %v399_v43 }
 0xf1d   :  { %v466_v58 = vpop.permute.xlu0 %465 }
 0xf1e   :  { %v468_v59 = vmul.f32 %v1051_v2, %v466_v58 }
 0xf20   :  { %470 = vrot.lane.b32.xlu1 %v468_v59, %s1090_s27 }
 0xf92   :  { %v471_v61 = vpop.permute.xlu1 %470 }
 0xf93   :  { %v473_v62 = vadd.f32 %v471_v61, %v463_v60 }
 0xf95   :  { %1052 = vtanh.f32 %v473_v62 }
 0xf9f   :  { %v1053_v63 = vpop.eup %1052 }
 0xfa0   :  { %476 = vrot.lane.b32.xlu0 %v1053_v63, %s1089_s26 }
0x1012   :  { %v477_v4 = vpop.permute.xlu0 %476 }
0x1013   :  { %v479_v5 = vmul.f32 %v1051_v2, %v477_v4  ;;  %v642_v2 = vrot.slane %v633_v55, %v641_v56 }
0x1015   :  { %v482_v6 = vpack.c.bf16 %v479_v5, %v479_v5 }
0x1017   :  { %484 = vrot.lane.b32.xlu1 %v482_v6, %s1090_s27 }
0x1089   :  { %v485_v7 = vpop.permute.xlu1 %484 }
0x108a   :  { %965 = vmatmul.mubr.msk.bf16.vlgmr.msra.gmra.mrb[12].mxu0 %vm41_vm1, %v485_v7 }
0x108b   :  { %703 = vmatprep.mubr.bf16.mxu0 %v1088_v3  ;;  %672 = vmatpush1.bf16.msra.mxu0 %v996_v44 }
0x108c   :  { %673 = vmatprep.subr.bf16.mxu0 %v1001_v46 }
0x108f   :  { %674 = vmatpush1.bf16.msra.mxu0 %v999_v47 }
0x115d   :  { %v523_v9 = vpop.f32.mrb[12].mxu0 }
0x115e   :  { %v529_v10 = vadd.f32 %v864_v8, %v523_v9  ;;  %v966_v11 = vpop.f32.mrb[13].mxu0 }
0x115f   :  { %v526_v12 = vpop.f32.mrb[14].mxu0 }
0x1160   :  { %1054 = vtanh.f32 %v529_v10  ;;  %v967_v13 = vpop.f32.mrb[15].mxu0  ;;  %v866_v15 = vmul.f32 -1.442695, %v529_v10 }
0x1162   :  { %1056 = vpow2.f32 %v866_v15 }
0x116a   :  { %v1055_v14 = vpop.eup %1054 }
0x116b   :  { %539 = vrot.lane.b32.xlu0 %v1055_v14, %s1089_s26 }
0x116c   :  { %v1057_v16 = vpop.eup %1056 }
0x116d   :  { %v533_v17 = vadd.f32 1.0, %v1057_v16 }
0x116f   :  { %1058 = vrcp.f32 %v533_v17 }
0x1179   :  { %v1059_v18 = vpop.eup %1058 }
0x117a   :  { %v537_v20 = vmul.f32 %v1059_v18, %v473_v62 }
0x11dd   :  { %v540_v3 = vpop.permute.xlu0 %539 }
0x11de   :  { %v542_v19 = vmul.f32 %v1059_v18, %v540_v3  ;;  %v1003_v3 = vld [vmem:[%s1299_s4 + $0x8] sm:$0xff]  }
0x11e0   :  { %544 = vrot.lane.b32.xlu1 %v542_v19, %s1090_s27  ;;  %v1004_v19 = vld [vmem:[%s1299_s4 + $0x10] sm:$0xff]  }
0x1252   :  { %v545_v21 = vpop.permute.xlu1 %544 }
0x1253   :  { %v547_v22 = vadd.f32 %v545_v21, %v537_v20 }
0x1255   :  { %1060 = vtanh.f32 %v547_v22 }
0x125f   :  { %v1061_v23 = vpop.eup %1060 }
0x1260   :  { %550 = vrot.lane.b32.xlu0 %v1061_v23, %s1089_s26 }
0x12d2   :  { %v551_v24 = vpop.permute.xlu0 %550 }
0x12d3   :  { %v553_v25 = vmul.f32 %v1059_v18, %v551_v24  ;;  %v1002_v18 = vld [vmem:[%s1299_s4] sm:$0xff]  }
0x12d5   :  { %v556_v26 = vpack.c.bf16 %v553_v25, %v553_v25 }
0x12d7   :  { %558 = vrot.lane.b32.xlu1 %v556_v26, %s1090_s27 }
0x1349   :  { %v559_v27 = vpop.permute.xlu1 %558 }
0x134a   :  { %973 = vmatmul.mubr.msk.bf16.vlgmr.msra.gmra.mrb[12].mxu1 %vm41_vm1, %v559_v27 }
0x134b   :  { %984 = vmatprep.mubr.msk.bf16.mxu1 %vm1087_vm0, %v1086_v0  ;;  %977 = vmatpush3.bf16.msra.mxu1 %v1002_v18 }
0x134c   :  { %978 = vmatprep.subr.bf16.mxu1 %v1086_v0 }
0x134f   :  { %979 = vmatpush3.bf16.msra.mxu1 %v1003_v3 }
0x1350   :  { %980 = vmatprep.subr.bf16.mxu1 %v1086_v0 }
0x1353   :  { %981 = vmatpush3.bf16.msra.mxu1 %v1004_v19 }
0x1354   :  { %982 = vmatprep.subr.bf16.mxu1 %v1086_v0  ;;  %v877_v0 = vld [vmem:[%s1300_s5] ss:$0 sm:$0xff] }
0x141d   :  { %v597_v29 = vpop.f32.mrb[12].mxu1 }
0x141e   :  { %v603_v30 = vadd.f32 %v867_v28, %v597_v29  ;;  %v974_v31 = vpop.f32.mrb[13].mxu1 }
0x141f   :  { %v600_v32 = vpop.f32.mrb[14].mxu1 }
0x1420   :  { %1062 = vtanh.f32 %v603_v30  ;;  %v975_v33 = vpop.f32.mrb[15].mxu1  ;;  %v869_v35 = vmul.f32 -1.442695, %v603_v30 }
0x1422   :  { %1064 = vpow2.f32 %v869_v35 }
0x142a   :  { %v1063_v34 = vpop.eup %1062 }
0x142b   :  { %613 = vrot.lane.b32.xlu0 %v1063_v34, %s1089_s26 }
0x142c   :  { %v1065_v36 = vpop.eup %1064 }
0x142d   :  { %v607_v37 = vadd.f32 1.0, %v1065_v36 }
0x142f   :  { %1066 = vrcp.f32 %v607_v37 }
0x1439   :  { %v1067_v38 = vpop.eup %1066 }
0x143a   :  { %v611_v41 = vmul.f32 %v1067_v38, %v547_v22  ;;  %v1005_v22 = vld [vmem:[%s1299_s4 + $0x18] sm:$0xff]  }
0x143b   :  { %983 = vmatpush3.bf16.msra.mxu1 %v1005_v22 }
0x149d   :  { %v614_v39 = vpop.permute.xlu0 %613 }
0x149e   :  { %v616_v40 = vmul.f32 %v1067_v38, %v614_v39 }
0x14a0   :  { %618 = vrot.lane.b32.xlu1 %v616_v40, %s1090_s27 }
0x1512   :  { %v619_v42 = vpop.permute.xlu1 %618 }
0x1513   :  { %v621_v43 = vadd.f32 %v619_v42, %v611_v41 }
0x1515   :  { %1068 = vtanh.f32 %v621_v43 }
0x151f   :  { %v1069_v48 = vpop.eup %1068 }
0x1520   :  { %624 = vrot.lane.b32.xlu0 %v1069_v48, %s1089_s26 }
0x1592   :  { %v625_v49 = vpop.permute.xlu0 %624 }
0x1593   :  { %v627_v50 = vmul.f32 %v1067_v38, %v625_v49 }
0x1595   :  { %v628_v51 = vpack.c.bf16 %v627_v50, %v627_v50 }
0x1597   :  { %646 = vrot.lane.b32.xlu1 %v628_v51, %s1090_s27 }
0x1609   :  { %v647_v52 = vpop.permute.xlu1 %646 }
0x160a   :  { %874 = vmatmul.mubr.msk.bf16.vlgmr.msra.gmra.mrb[16].mxu0 %vm41_vm1, %v647_v52 }
0x16dd   :  { %v705_v58 = vpop.f32.mrb[16].mxu0 }
0x16de   :  { %v706_v59 = vadd.f32 %v705_v58, %v638_v57  ;;  %v707_v60 = vpop.f32.mrb[17].mxu0 }
0x16df   :  { %v708_v61 = vadd.f32 %v707_v60, %v642_v2  ;;  %v709_v62 = vpop.f32.mrb[18].mxu0 }
0x16e0   :  { %1070 = vtanh.f32 %v706_v59  ;;  %v710_v63 = vpop.f32.mrb[19].mxu0  ;;  %v875_v6 = vmul.f32 -1.442695, %v706_v59 }
0x16e1   :  { %1072 = vtanh.f32 %v708_v61  ;;  %v876_v7 = vmul.f32 -1.442695, %v708_v61 }
0x16e2   :  { %1074 = vpow2.f32 %v875_v6 }
0x16e3   :  { %1076 = vpow2.f32 %v876_v7 }
0x16ea   :  { %v1071_v4 = vpop.eup %1070 }
0x16eb   :  { %v1073_v5 = vpop.eup %1072  ;;  %727 = vrot.lane.b32.xlu0 %v1071_v4, %s1089_s26 }
0x16ec   :  { %738 = vrot.lane.b32.xlu1 %v1073_v5, %s1089_s26  ;;  %v1075_v8 = vpop.eup %1074 }
0x16ed   :  { %v1077_v9 = vpop.eup %1076  ;;  %v718_v10 = vadd.f32 1.0, %v1075_v8 }
0x16ee   :  { %v719_v11 = vadd.f32 1.0, %v1077_v9 }
0x16ef   :  { %1078 = vrcp.f32 %v718_v10 }
0x16f0   :  { %1080 = vrcp.f32 %v719_v11 }
0x16f9   :  { %v1079_v12 = vpop.eup %1078 }
0x16fa   :  { %v1081_v14 = vpop.eup %1080 }
0x175d   :  { %v728_v13 = vpop.permute.xlu0 %727 }
0x175e   :  { %v730_v15 = vmul.f32 %v1079_v12, %v728_v13  ;;  %v739_v16 = vpop.permute.xlu1 %738 }
0x175f   :  { %v741_v17 = vmul.f32 %v1081_v14, %v739_v16 }
0x1760   :  { %1082 = vtanh.f32 %v730_v15 }
0x1761   :  { %1084 = vtanh.f32 %v741_v17 }
0x176a   :  { %v1083_v20 = vpop.eup %1082 }
0x176b   :  { %v1085_v21 = vpop.eup %1084  ;;  %733 = vrot.lane.b32.xlu0 %v1083_v20, %s1091_s8 }
0x176c   :  { %744 = vrot.lane.b32.xlu1 %v1085_v21, %s1091_s8 }
0x17dd   :  { %v734_v23 = vpop.permute.xlu0 %733 }
0x17de   :  { %v736_v24 = vmul.f32 %v1079_v12, %v734_v23  ;;  %v745_v25 = vpop.permute.xlu1 %744 }
0x17df   :  { %v747_v26 = vmul.f32 %v1081_v14, %v745_v25 }
0x17e0   :  { %749 = vrot.lane.b32.xlu0 %v736_v24, %s1090_s27 }
0x17e1   :  { %753 = vrot.lane.b32.xlu1 %v747_v26, %s1089_s26 }
0x1852   :  { %v750_v27 = vpop.permute.xlu0 %749 }
0x1853   :  { %v754_v28 = vpop.permute.xlu1 %753 }
0x1854   :  { %v756_v29 = vsel %vm41_vm1, %v750_v27, %v754_v28 }
0x1855   :  { %v757_v30 = vpack.c.bf16 %v756_v29, %v756_v29 }
0x1857   :  { %985 = vmatmul.mubr.msk.bf16.vlgmr.msra.gmra.mrb[16].mxu1 %vm797_vm2, %v757_v30 }
0x192a   :  { %v835_v31 = vpop.f32.mrb[16].mxu1 }
0x192b   :  { %v836_v32 = vadd.f32 %v877_v0, %v835_v31  ;;  %v986_v33 = vpop.f32.mrb[17].mxu1 }
0x192c   :  { %v838_v34 = vpop.f32.mrb[18].mxu1 }
0x192d   :  { %841 = vst [vmem:[%s1301_s6] sm:$0xff] %v836_v32  ;;  %v987_v35 = vpop.f32.mrb[19].mxu1 }

</bundles_post_ra>
